<compile_context>
chip_gen: v6e
topology: v6e:2x2x1
jax: 0.10.0
libtpu: 0.0.40
codegen_flags: <defaults>
</compile_context>

<pallas_src>
import functools

import jax
import jax.numpy as jnp
from jax.experimental import pallas as pl
from jax.experimental.pallas import tpu as pltpu

ALPHA = 1.0
NEGATIVE_RATIO = 3


# --------------------------------------------------------------------------- #
# Kernel 1: per-anchor NLL, smooth-L1, positive mask and mining key            #
# --------------------------------------------------------------------------- #
def _prep_kernel(bbox_in_ref, bbox_tgt_ref, label_in_ref, tgt_ref,
                 v_ref, ll_ref, pos_ref, bbox_ref, *, num_anchors):
    i = pl.program_id(0)
    b, c, ta = label_in_ref.shape

    tgt = tgt_ref[...]                                    # [B, TA] int32 (0 in padding)
    pos_f = (tgt > 0).astype(jnp.float32)                 # [B, TA]

    # label_input is streamed unpadded: anchors >= num_anchors in the tail tile hold garbage.
    lane = jax.lax.broadcasted_iota(jnp.int32, (b, ta), 1)
    valid = (i * ta + lane) < num_anchors                 # [B, TA] bool

    # NLL gather: label_loss[b, a] = -label_input[b, tgt[b, a], a]
    li = label_in_ref[...]                                # [B, C, TA] log-probs
    class_ids = jax.lax.broadcasted_iota(jnp.int32, (c, ta), 0)      # [C, TA]
    onehot = class_ids[None, :, :] == tgt[:, None, :]                # [B, C, TA] bool
    label_loss = -jnp.sum(jnp.where(onehot, li, 0.0), axis=1)        # [B, TA]
    label_loss = jnp.where(valid, label_loss, 0.0)        # zero out tail-tile garbage

    # smooth L1 (sum over the 4 coords on the sublane axis), masked by positive
    d = bbox_in_ref[...] - bbox_tgt_ref[...]              # [B, 4, TA]
    ad = jnp.abs(d)
    sl1 = jnp.where(ad < 1.0, 0.5 * d * d, ad - 0.5)
    bbox_ref[...] = jnp.sum(sl1, axis=1) * pos_f          # [B, TA]

    ll_ref[...] = label_loss
    pos_ref[...] = pos_f
    # mining key: 0 for positives (and padding), -label_loss for negatives
    v_ref[...] = label_loss * (pos_f - 1.0)


# --------------------------------------------------------------------------- #
# Kernel 2: hard-negative mining with VMEM-resident keys and in-kernel J loop  #
# --------------------------------------------------------------------------- #
def _mining_kernel(v_a_ref, v_all_ref, ll_ref, pos_ref, num_neg_ref, out_ref,
                   lt_part_ref, eq_part_ref):
    lt_part_ref[...] = jnp.zeros_like(lt_part_ref)
    eq_part_ref[...] = jnp.zeros_like(eq_part_ref)

    # Hoist the lane broadcast of the current A-tile's keys out of the chunk loop.
    v_a = jnp.broadcast_to(v_a_ref[...][:, :, None], lt_part_ref.shape)   # [B, MT, 128]
    n_chunks = v_all_ref.shape[1]

    def body(jc, carry):
        vj = v_all_ref[:, pl.ds(jc, 1), :]                # [B, 1, 128] chunk of all keys
        # Defer the cross-lane reduce: per-lane partial counts accumulate on the VPU only.
        lt_part_ref[...] += (vj < v_a).astype(jnp.float32)
        eq_part_ref[...] += (vj == v_a).astype(jnp.float32)
        return carry

    jax.lax.fori_loop(0, n_chunks, body, 0)

    # Single cross-lane reduce per tile (f32 counts are exact for A < 2^24).
    cnt_lt = jnp.sum(lt_part_ref[...], axis=2)            # [B, MT]
    cnt_eq = jnp.sum(eq_part_ref[...], axis=2)            # >= 1 (self compare included)
    num_neg = num_neg_ref[:, 0:1]                         # [B, 1]
    # Elements taken from each tie group, split evenly across the group; ties share the same
    # label_loss so the summed loss equals the reference's stable-sort selection.
    take = jnp.clip(num_neg - cnt_lt, 0.0, cnt_eq)
    weight = jnp.where(pos_ref[...] > 0.0, 1.0, take / cnt_eq)
    out_ref[...] = ll_ref[...] * weight


# --------------------------------------------------------------------------- #
# Tiling / VMEM heuristics                                                     #
# --------------------------------------------------------------------------- #
def _vmem_limit_bytes():
    """~75% of the per-core VMEM (96 MiB on v5e/v6e, 48 MiB on v7x); safe fallback."""
    try:
        cap = int(pltpu.get_tpu_info().vmem_capacity_bytes)
        if cap > 0:
            return (cap * 3) // 4
    except Exception:
        pass
    return 48 * 1024 * 1024   # safe on every generation (even v7x's 64 MiB)


def _pick_tile(batch, num_classes, num_anchors, vmem_limit):
    """Largest lane tile (multiple of 128) so ~4 live [B, C, tile] f32 slabs (label_input
    double-buffer + temporaries) stay within about half the VMEM budget."""
    budget = vmem_limit // 2
    per_lane = 4 * batch * num_classes * 4
    tile = 128
    for cand in (1024, 512, 256, 128):
        if per_lane * cand <= budget:
            tile = cand
            break
    a_ceil = pl.cdiv(num_anchors, 128) * 128
    return min(tile, a_ceil)


def _mining_tile(tile):
    """Mining A-tile: <=512 (bounds the [B, MT, 128] count scratch) and divides `tile`."""
    if tile <= 512:
        return tile
    for cand in (512, 256, 128):
        if tile % cand == 0:
            return cand
    return 128


# --------------------------------------------------------------------------- #
# Wrapper                                                                      #
# --------------------------------------------------------------------------- #
def ssd_loss(bbox_input, bbox_target, label_input, label_target,
             *, tile=None, alpha=ALPHA, negative_ratio=NEGATIVE_RATIO):
    """Pallas SSDLoss forward. Returns a scalar float32 loss.

    bbox_input/bbox_target: [B, A, 4]; label_input: [B, C, A] log-probs;
    label_target: [B, A] int (0 == background).
    """
    B, A, _ = bbox_input.shape
    C = label_input.shape[1]
    assert label_input.shape == (B, C, A)
    assert label_target.shape == (B, A)
    assert A < (1 << 24), "f32 count accumulators require num_anchors < 2^24"

    vmem_limit = _vmem_limit_bytes()
    if tile is None:
        tile = _pick_tile(B, C, A, vmem_limit)
    assert tile % 128 == 0 and tile > 0

    n_tiles = pl.cdiv(A, tile)
    P = n_tiles * tile
    pad = P - A

    bbox_input = bbox_input.astype(jnp.float32)
    bbox_target = bbox_target.astype(jnp.float32)
    label_input = label_input.astype(jnp.float32)
    lab_tg_i32 = label_target.astype(jnp.int32)

    # Only the small tensors are padded (cheap); the large [B, C, A] label_input is streamed
    # unpadded and its tail tile is masked inside the kernel. Anchors live on the lane dim.
    bbox_in = jnp.pad(jnp.transpose(bbox_input, (0, 2, 1)), ((0, 0), (0, 0), (0, pad)))
    bbox_tg = jnp.pad(jnp.transpose(bbox_target, (0, 2, 1)), ((0, 0), (0, 0), (0, pad)))
    lab_tg = jnp.pad(lab_tg_i32, ((0, 0), (0, pad)))

    v, label_loss, pos_f, bbox_partial = pl.pallas_call(
        functools.partial(_prep_kernel, num_anchors=A),
        grid=(n_tiles,),
        in_specs=[
            pl.BlockSpec((B, 4, tile), lambda i: (0, 0, i)),
            pl.BlockSpec((B, 4, tile), lambda i: (0, 0, i)),
            pl.BlockSpec((B, C, tile), lambda i: (0, 0, i)),
            pl.BlockSpec((B, tile), lambda i: (0, i)),
        ],
        out_specs=[pl.BlockSpec((B, tile), lambda i: (0, i))] * 4,
        out_shape=[jax.ShapeDtypeStruct((B, P), jnp.float32)] * 4,
        compiler_params=pltpu.CompilerParams(
            dimension_semantics=("parallel",),
            vmem_limit_bytes=vmem_limit,
        ),
    )(bbox_in, bbox_tg, label_input, lab_tg)

    positive = lab_tg_i32 > 0
    num_pos_total = jnp.sum(positive).astype(jnp.float32)
    num_neg = (negative_ratio * jnp.sum(positive, axis=1)).astype(jnp.float32)      # [B]
    num_neg_b = jnp.broadcast_to(num_neg[:, None], (B, 128))                        # lane-dense

    mt = _mining_tile(tile)
    n_chunks = P // 128
    v_all = v.reshape(B, n_chunks, 128)      # free layout-wise; VMEM-resident in kernel 2

    weighted_ll = pl.pallas_call(
        _mining_kernel,
        grid=(P // mt,),
        in_specs=[
            pl.BlockSpec((B, mt), lambda i: (0, i)),                 # v  (current A-tile)
            pl.BlockSpec((B, n_chunks, 128), lambda i: (0, 0, 0)),   # v  (full, resident)
            pl.BlockSpec((B, mt), lambda i: (0, i)),                 # label_loss (A-tile)
            pl.BlockSpec((B, mt), lambda i: (0, i)),                 # positive mask (A-tile)
            pl.BlockSpec((B, 128), lambda i: (0, 0)),                # num_neg per batch
        ],
        out_specs=pl.BlockSpec((B, mt), lambda i: (0, i)),
        out_shape=jax.ShapeDtypeStruct((B, P), jnp.float32),
        scratch_shapes=[
            pltpu.VMEM((B, mt, 128), jnp.float32),   # per-lane partial count_lt
            pltpu.VMEM((B, mt, 128), jnp.float32),   # per-lane partial count_eq
        ],
        compiler_params=pltpu.CompilerParams(
            dimension_semantics=("parallel",),
            vmem_limit_bytes=vmem_limit,
        ),
    )(v, v_all, label_loss, pos_f, num_neg_b)

    bbox_loss_sum = jnp.sum(bbox_partial)
    label_loss_sum = jnp.sum(weighted_ll)
    # Matches the PyTorch original: no num_pos == 0 guard (loss -> inf in that case).
    return (bbox_loss_sum + alpha * label_loss_sum) / num_pos_total


# --------------------------------------------------------------------------- #
# Pure-JAX reference (mirrors the PyTorch forward)                             #
# --------------------------------------------------------------------------- #
def ssd_loss_ref(bbox_input, bbox_target, label_input, label_target):
    positive = label_target > 0
    num_pos = jnp.sum(positive).astype(jnp.float32)

    d = bbox_input - bbox_target
    ad = jnp.abs(d)
    sl1 = jnp.where(ad < 1.0, 0.5 * d * d, ad - 0.5)
    bbox_loss = jnp.sum(sl1 * positive[..., None]) / num_pos

    label_loss = -jnp.take_along_axis(label_input, label_target[:, None, :], axis=1)[:, 0, :]

    v = label_loss * (positive.astype(jnp.float32) - 1.0)
    idx = jnp.argsort(v, axis=1)
    rank = jnp.argsort(idx, axis=1)
    num_neg = NEGATIVE_RATIO * jnp.sum(positive, axis=1)
    negative = rank < num_neg[:, None]
    sel = positive | negative
    label_loss_sum = jnp.sum(label_loss * sel) / num_pos
    return bbox_loss + ALPHA * label_loss_sum


if __name__ == "__main__":
    # A = 300: not a multiple of 128, so the unpadded-label_input tail-tile masking is
    # exercised both with the auto tile (single partial block) and with tile=128 (3 blocks).
    B, A, C = 2, 300, 8

    key = jax.random.PRNGKey(0)
    k1, k2, k3, k4, k5 = jax.random.split(key, 5)

    bbox_input = jax.random.normal(k1, (B, A, 4), dtype=jnp.float32)
    bbox_target = jax.random.normal(k2, (B, A, 4), dtype=jnp.float32)
    logits = jax.random.normal(k3, (B, C, A), dtype=jnp.float32)
    label_input = jax.nn.log_softmax(logits, axis=1)                 # [B, C, A] log-probs

    # ~12% positives so hard-negative mining selects a strict subset of negatives.
    fg = jax.random.randint(k4, (B, A), 1, C, dtype=jnp.int32)
    coin = jax.random.uniform(k5, (B, A))
    label_target = jnp.where(coin < 0.12, fg, 0).astype(jnp.int32)

    ref = jax.block_until_ready(ssd_loss_ref(bbox_input, bbox_target, label_input, label_target))

    # Auto tile (large, single partial block) and forced small tile (multi-tile grid).
    loss_auto = jax.block_until_ready(
        ssd_loss(bbox_input, bbox_target, label_input, label_target))
    loss_t128 = jax.block_until_ready(
        ssd_loss(bbox_input, bbox_target, label_input, label_target, tile=128))

    for loss in (loss_auto, loss_t128):
        assert jnp.isfinite(loss), "loss is not finite"
        assert jnp.allclose(loss, ref, rtol=3e-5, atol=3e-5), (loss, ref)
    print("KERNEL_OK")
</pallas_src>

<mosaic_0001>
module attributes {stable_mosaic.version = 11 : i64} {
  func.func @_prep_kernel(%arg0: i32, %arg1: memref<2x4x384xf32, #tpu.memory_space<vmem>>, %arg2: memref<2x4x384xf32, #tpu.memory_space<vmem>>, %arg3: memref<2x8x384xf32, #tpu.memory_space<vmem>>, %arg4: memref<2x384xi32, #tpu.memory_space<vmem>>, %arg5: memref<2x384xf32, #tpu.memory_space<vmem>>, %arg6: memref<2x384xf32, #tpu.memory_space<vmem>>, %arg7: memref<2x384xf32, #tpu.memory_space<vmem>>, %arg8: memref<2x384xf32, #tpu.memory_space<vmem>>) attributes {dimension_semantics = [#tpu.dimension_semantics<parallel>], iteration_bounds = array<i64: 1>, scalar_prefetch = 0 : i64, scratch_operands = 0 : i64, tpu.core_type = #tpu.core_type<tc>, window_params = [{transform_indices = @transform_0, window_bounds = array<i64: 2, 4, 384>}, {transform_indices = @transform_1, window_bounds = array<i64: 2, 4, 384>}, {transform_indices = @transform_2, window_bounds = array<i64: 2, 8, 384>}, {transform_indices = @transform_3, window_bounds = array<i64: 2, 384>}, {transform_indices = @transform_4, window_bounds = array<i64: 2, 384>}, {transform_indices = @transform_5, window_bounds = array<i64: 2, 384>}, {transform_indices = @transform_6, window_bounds = array<i64: 2, 384>}, {transform_indices = @transform_7, window_bounds = array<i64: 2, 384>}]} {
    %c0 = arith.constant 0 : index
    %c0_0 = arith.constant 0 : index
    %0 = vector.load %arg4[%c0, %c0_0] : memref<2x384xi32, #tpu.memory_space<vmem>>, vector<2x384xi32>
    %c0_i32 = arith.constant 0 : i32
    %1 = vector.broadcast %c0_i32 : i32 to vector<2x384xi32>
    %2 = arith.cmpi sgt, %0, %1 : vector<2x384xi32>
    %3 = arith.extui %2 : vector<2x384xi1> to vector<2x384xi32>
    %4 = arith.sitofp %3 : vector<2x384xi32> to vector<2x384xf32>
    %5 = tpu.iota {dimensions = array<i32: 1>} : vector<2x384xi32>
    %c384_i32 = arith.constant 384 : i32
    %6 = arith.muli %arg0, %c384_i32 : i32
    %7 = vector.broadcast %6 : i32 to vector<2x384xi32>
    %8 = arith.addi %7, %5 : vector<2x384xi32>
    %c300_i32 = arith.constant 300 : i32
    %9 = vector.broadcast %c300_i32 : i32 to vector<2x384xi32>
    %10 = arith.cmpi slt, %8, %9 : vector<2x384xi32>
    %c0_1 = arith.constant 0 : index
    %c0_2 = arith.constant 0 : index
    %c0_3 = arith.constant 0 : index
    %11 = vector.load %arg3[%c0_1, %c0_2, %c0_3] : memref<2x8x384xf32, #tpu.memory_space<vmem>>, vector<2x8x384xf32>
    %12 = tpu.iota {dimensions = array<i32: 0>} : vector<8x384xi32>
    %13 = vector.shape_cast %12 : vector<8x384xi32> to vector<1x8x384xi32>
    %14 = vector.shape_cast %0 : vector<2x384xi32> to vector<2x1x384xi32>
    %15 = vector.broadcast %13 : vector<1x8x384xi32> to vector<2x8x384xi32>
    %16 = vector.broadcast %14 : vector<2x1x384xi32> to vector<2x8x384xi32>
    %17 = arith.cmpi eq, %15, %16 : vector<2x8x384xi32>
    %cst = arith.constant 0.000000e+00 : f32
    %18 = vector.broadcast %cst : f32 to vector<2x8x384xf32>
    %19 = arith.select %17, %11, %18 : vector<2x8x384xi1>, vector<2x8x384xf32>
    %cst_4 = arith.constant dense<0.000000e+00> : vector<2x384xf32>
    %20 = vector.multi_reduction <add>, %19, %cst_4 [1] : vector<2x8x384xf32> to vector<2x384xf32>
    %cst_5 = arith.constant 0.000000e+00 : f32
    %21 = vector.broadcast %cst_5 : f32 to vector<2x384xf32>
    %22 = arith.subf %21, %20 : vector<2x384xf32>
    %cst_6 = arith.constant 0.000000e+00 : f32
    %23 = vector.broadcast %cst_6 : f32 to vector<2x384xf32>
    %24 = arith.select %10, %22, %23 : vector<2x384xi1>, vector<2x384xf32>
    %c0_7 = arith.constant 0 : index
    %c0_8 = arith.constant 0 : index
    %c0_9 = arith.constant 0 : index
    %25 = vector.load %arg1[%c0_7, %c0_8, %c0_9] : memref<2x4x384xf32, #tpu.memory_space<vmem>>, vector<2x4x384xf32>
    %c0_10 = arith.constant 0 : index
    %c0_11 = arith.constant 0 : index
    %c0_12 = arith.constant 0 : index
    %26 = vector.load %arg2[%c0_10, %c0_11, %c0_12] : memref<2x4x384xf32, #tpu.memory_space<vmem>>, vector<2x4x384xf32>
    %27 = arith.subf %25, %26 : vector<2x4x384xf32>
    %28 = math.absf %27 : vector<2x4x384xf32>
    %cst_13 = arith.constant 1.000000e+00 : f32
    %29 = vector.broadcast %cst_13 : f32 to vector<2x4x384xf32>
    %30 = arith.cmpf olt, %28, %29 : vector<2x4x384xf32>
    %cst_14 = arith.constant 5.000000e-01 : f32
    %31 = vector.broadcast %cst_14 : f32 to vector<2x4x384xf32>
    %32 = arith.mulf %31, %27 : vector<2x4x384xf32>
    %33 = arith.mulf %32, %27 : vector<2x4x384xf32>
    %cst_15 = arith.constant 5.000000e-01 : f32
    %34 = vector.broadcast %cst_15 : f32 to vector<2x4x384xf32>
    %35 = arith.subf %28, %34 : vector<2x4x384xf32>
    %36 = arith.select %30, %33, %35 : vector<2x4x384xi1>, vector<2x4x384xf32>
    %cst_16 = arith.constant dense<0.000000e+00> : vector<2x384xf32>
    %37 = vector.multi_reduction <add>, %36, %cst_16 [1] : vector<2x4x384xf32> to vector<2x384xf32>
    %38 = arith.mulf %37, %4 : vector<2x384xf32>
    %c0_17 = arith.constant 0 : index
    %c0_18 = arith.constant 0 : index
    %39 = vector.load %arg8[%c0_17, %c0_18] : memref<2x384xf32, #tpu.memory_space<vmem>>, vector<2x384xf32>
    tpu.vector_store %arg8[%c0_17, %c0_18], %38 {strides = array<i32>} : memref<2x384xf32, #tpu.memory_space<vmem>>, vector<2x384xf32>,
    %c0_19 = arith.constant 0 : index
    %c0_20 = arith.constant 0 : index
    %40 = vector.load %arg6[%c0_19, %c0_20] : memref<2x384xf32, #tpu.memory_space<vmem>>, vector<2x384xf32>
    tpu.vector_store %arg6[%c0_19, %c0_20], %24 {strides = array<i32>} : memref<2x384xf32, #tpu.memory_space<vmem>>, vector<2x384xf32>,
    %c0_21 = arith.constant 0 : index
    %c0_22 = arith.constant 0 : index
    %41 = vector.load %arg7[%c0_21, %c0_22] : memref<2x384xf32, #tpu.memory_space<vmem>>, vector<2x384xf32>
    tpu.vector_store %arg7[%c0_21, %c0_22], %4 {strides = array<i32>} : memref<2x384xf32, #tpu.memory_space<vmem>>, vector<2x384xf32>,
    %cst_23 = arith.constant 1.000000e+00 : f32
    %42 = vector.broadcast %cst_23 : f32 to vector<2x384xf32>
    %43 = arith.subf %4, %42 : vector<2x384xf32>
    %44 = arith.mulf %24, %43 : vector<2x384xf32>
    %c0_24 = arith.constant 0 : index
    %c0_25 = arith.constant 0 : index
    %45 = vector.load %arg5[%c0_24, %c0_25] : memref<2x384xf32, #tpu.memory_space<vmem>>, vector<2x384xf32>
    tpu.vector_store %arg5[%c0_24, %c0_25], %44 {strides = array<i32>} : memref<2x384xf32, #tpu.memory_space<vmem>>, vector<2x384xf32>,
    return
  }
  func.func @transform_0(%arg0: i32) -> (i32, i32, i32) {
    %c0_i32 = arith.constant 0 : i32
    %c0_i32_0 = arith.constant 0 : i32
    %c0_i32_1 = arith.constant 0 : i32
    return %c0_i32, %c0_i32_0, %arg0 : i32, i32, i32
  }
  func.func @transform_1(%arg0: i32) -> (i32, i32, i32) {
    %c0_i32 = arith.constant 0 : i32
    %c0_i32_0 = arith.constant 0 : i32
    %c0_i32_1 = arith.constant 0 : i32
    return %c0_i32, %c0_i32_0, %arg0 : i32, i32, i32
  }
  func.func @transform_2(%arg0: i32) -> (i32, i32, i32) {
    %c0_i32 = arith.constant 0 : i32
    %c0_i32_0 = arith.constant 0 : i32
    %c0_i32_1 = arith.constant 0 : i32
    return %c0_i32, %c0_i32_0, %arg0 : i32, i32, i32
  }
  func.func @transform_3(%arg0: i32) -> (i32, i32) {
    %c0_i32 = arith.constant 0 : i32
    %c0_i32_0 = arith.constant 0 : i32
    return %c0_i32, %arg0 : i32, i32
  }
  func.func @transform_4(%arg0: i32) -> (i32, i32) {
    %c0_i32 = arith.constant 0 : i32
    %c0_i32_0 = arith.constant 0 : i32
    return %c0_i32, %arg0 : i32, i32
  }
  func.func @transform_5(%arg0: i32) -> (i32, i32) {
    %c0_i32 = arith.constant 0 : i32
    %c0_i32_0 = arith.constant 0 : i32
    return %c0_i32, %arg0 : i32, i32
  }
  func.func @transform_6(%arg0: i32) -> (i32, i32) {
    %c0_i32 = arith.constant 0 : i32
    %c0_i32_0 = arith.constant 0 : i32
    return %c0_i32, %arg0 : i32, i32
  }
  func.func @transform_7(%arg0: i32) -> (i32, i32) {
    %c0_i32 = arith.constant 0 : i32
    %c0_i32_0 = arith.constant 0 : i32
    return %c0_i32, %arg0 : i32, i32
  }
}

</mosaic_0001>

<bundles_post_ra>
// kernel: tpu_custom_call.1
= control target key start
LH: loop header
LB: loop body
LE: loop exit
PB: predicated region body
PF: predicated region fallthrough
CT: control target
= control target key end

     0   :  { %13 = vsyncpa [#allocation3], 0  ;;  %s886_s0 = inlined_call_operand.hbm [shape: f32[2,4,384], index: 0, kind: input, shape index: {}]   ;;  %s887_s1 = inlined_call_operand.hbm [shape: f32[2,4,384], index: 1, kind: input, shape index: {}]   ;;  %s888_s2 = inlined_call_operand.hbm [shape: f32[2,8,300], index: 2, kind: input, shape index: {}]   ;;  %s889_s3 = inlined_call_operand.hbm [shape: s32[2,384], index: 3, kind: input, shape index: {}]   ;;  %s890_s4 = inlined_call_operand.hbm [shape: f32[2,384], index: 4, kind: output, shape index: {0}]   ;;  %s891_s5 = inlined_call_operand.hbm [shape: f32[2,384], index: 5, kind: output, shape index: {1}]   ;;  %s892_s6 = inlined_call_operand.hbm [shape: f32[2,384], index: 6, kind: output, shape index: {2}]   ;;  %s893_s7 = inlined_call_operand.hbm [shape: f32[2,384], index: 7, kind: output, shape index: {3}]  }
   0x1   :  { %14 = vsyncpa [#allocation6], 0 }
   0x2   :  { %15 = vsyncpa [#allocation9], 0 }
   0x3   :  { %16 = vsyncpa [#allocation4], 0 }
   0x4   :  { %17 = vsyncpa [#allocation12], 0 }
   0x5   :  { %18 = vsyncpa [#allocation15], 0  ;;  %s690_s24 = smov [#allocation5]   ;;  %s691_s26 = smov [#allocation2]  }
   0x6   :  { %s36_s25 = sshll.u32 %s690_s24, 4  ;;  %s24_s27 = sshll.u32 %s691_s26, 4  ;;  %s37_s25 = int_to_ptr.vmem [resolvable:$true] %s36_s25  ;;  %s25_s27 = int_to_ptr.vmem [resolvable:$true] %s24_s27 }
   0x7   :  { %s526_s28 = scalar_lea.vmem %s37_s25, 384  ;;  %p531_p1 = scmp.lt.s32.totalorder %s37_s25, %s37_s25 }
   0x8   :  { %p527_p0 = scmp.ne.s32.totalorder %s37_s25, %s526_s28  ;;  %p532_p2 = scmp.lt.s32.totalorder %s526_s28, %s526_s28 }
   0xa   :  { %p533_p3 = por %p532_p2, %p531_p1 }
   0xc   :  { %p534_p4 = pnand %p533_p3, %p527_p0 }
   0xe   :  { %537 = shalt.err (!%p534_p4)
}
   0xf   :  { %s692_s29 = smov 192   ;;  %s693_s30 = smov 12  }
  0x10   :  { %42 = dma.hbm_to_vmem [thread:$0]  %s887_s1, 384, %s37_s25, [#allocation6], %s692_s29, %s692_s29, %s693_s30  }
  0x11   :  { %s546_s10 = scalar_lea.vmem %s25_s27, 384  ;;  %p551_p6 = scmp.lt.s32.totalorder %s25_s27, %s25_s27 }
  0x12   :  { %p547_p5 = scmp.ne.s32.totalorder %s25_s27, %s546_s10  ;;  %p552_p7 = scmp.lt.s32.totalorder %s546_s10, %s546_s10 }
  0x14   :  { %p553_p8 = por %p552_p7, %p551_p6 }
  0x16   :  { %p554_p9 = pnand %p553_p8, %p547_p5 }
  0x18   :  { %557 = shalt.err (!%p554_p9)
}
  0x19   :  { %30 = dma.hbm_to_vmem [thread:$0]  %s886_s0, 384, %s25_s27, [#allocation3], %s692_s29, %s692_s29, %s693_s30  }
  0x1a   :  { %s694_s13 = smov [#allocation7]  }
  0x1b   :  { %s48_s14 = sshll.u32 %s694_s13, 4  ;;  %s49_s14 = int_to_ptr.vmem [resolvable:$true] %s48_s14 }
  0x1c   :  { %s566_s15 = scalar_lea.vmem %s49_s14, 768  ;;  %p571_p11 = scmp.lt.s32.totalorder %s49_s14, %s49_s14 }
  0x1d   :  { %p567_p10 = scmp.ne.s32.totalorder %s49_s14, %s566_s15  ;;  %p572_p12 = scmp.lt.s32.totalorder %s566_s15, %s566_s15 }
  0x1f   :  { %p573_p13 = por %p572_p12, %p571_p11 }
  0x21   :  { %p574_p0 = pnand %p573_p13, %p567_p10 }
  0x23   :  { %577 = shalt.err (!%p574_p0)
}
  0x24   :  { %s695_s1 = smov 384   ;;  %s696_s16 = smov 24  }
  0x25   :  { %54 = dma.hbm_to_vmem [thread:$0]  %s888_s2, 768, %s49_s14, [#allocation6], %s695_s1, %s695_s1, %s696_s16  }
  0x26   :  { %s697_s19 = smov [#allocation8]  }
  0x27   :  { %s61_s20 = sshll.u32 %s697_s19, 4  ;;  %s62_s20 = int_to_ptr.vmem [resolvable:$true] %s61_s20 }
  0x28   :  { %s586_s0 = scalar_lea.vmem %s62_s20, 96  ;;  %p591_p2 = scmp.lt.s32.totalorder %s62_s20, %s62_s20 }
  0x29   :  { %p587_p1 = scmp.ne.s32.totalorder %s62_s20, %s586_s0  ;;  %p592_p3 = scmp.lt.s32.totalorder %s586_s0, %s586_s0 }
  0x2b   :  { %p593_p4 = por %p592_p3, %p591_p2 }
  0x2d   :  { %p594_p5 = pnand %p593_p4, %p587_p1 }
  0x2f   :  { %597 = shalt.err (!%p594_p5)
}
  0x30   :  { %64 = dma.hbm_to_vmem [thread:$0]  %s889_s3, 96, %s62_s20, [#allocation9]  }
  0x31   :  { %678 = dma.done.wait [#allocation3], 384  }
  0x32   :  { %679 = vsyncadd [#allocation3], 4294966912 }
  0x33   :  { %680 = dma.done.wait [#allocation6], 1152  }
  0x34   :  { %681 = vsyncadd [#allocation6], 4294966144 }
  0x35   :  { %682 = dma.done.wait [#allocation9], 96  }
  0x36   :  { %683 = vsyncadd [#allocation9], 4294967200  ;;  %v81_v0 = vlaneseq  ;;  %v698_v1 = vmov 1966171168   ;;  %v699_v4 = vmov 1983009808  }
  0x37   :  { %v102_v2 = vunpack.c.l.s4 %v698_v1  ;;  %v291_v5 = vunpack.c.l.s4 %v699_v4  ;;  %v77_v13 = vld [vmem:[#allocation8] sm:$0x3f]  ;;  %v700_v17 = vmov 0.0   ;;  %v93_v20 = vld [vmem:[#allocation7] sm:$0xff]  ;;  %v204_v25 = vld [vmem:[#allocation2 + $0x8] sm:$0xf] }
  0x38   :  { %v100_v3 = vshrl.u32 %v81_v0, 7  ;;  %v82_v7 = vand.u32 127, %v81_v0  ;;  %vm78_vm0 = vcmp.gt.s32.totalorder %v77_v13, 0  ;;  %v203_v19 = vld [vmem:[#allocation2] sm:$0xff]  ;;  %v207_v26 = vld [vmem:[#allocation5] sm:$0xff]  ;;  %v96_v34 = vld [vmem:[#allocation7 + $0x18] sm:$0xff] }
  0x39   :  { %v103_v6 = vunpack.c.0.s8 %v102_v2  ;;  %v292_v9 = vunpack.c.0.s8 %v291_v5  ;;  %v761_v18 = vsel %vm78_vm0, 1.0, %v700_v17  ;;  %v94_v27 = vld [vmem:[#allocation7 + $0x8] sm:$0xff]  ;;  %v95_v28 = vld [vmem:[#allocation7 + $0x10] sm:$0xff]  ;;  %v764_v30 = vsub.f32 %v203_v19, %v207_v26  ;;  %v97_v35 = vld [vmem:[#allocation7 + $0x20] sm:$0xff]  ;;  %s701_s2 = smov [#allocation11]   ;;  %s702_s23 = smov [#allocation13]  }
  0x3a   :  { %v111_v10 = vsub.s32 0, %v100_v3  ;;  %v115_v11 = vsub.s32 1, %v100_v3  ;;  %v119_v12 = vsub.s32 2, %v100_v3  ;;  %v759_v16 = vadd.s32 256, %v82_v7  ;;  %393 = vst [vmem:[#allocation13] sm:$0x3f] %v761_v18 }
  0x3b   :  { %v106_v8 = vsub.s32 %v103_v6, %v100_v3  ;;  %v757_v14 = vsub.s32 %v292_v9, %v100_v3  ;;  %v208_v29 = vld [vmem:[#allocation5 + $0x8] sm:$0xf]  ;;  %v289_v31 = vcombine.high %v761_v18, %v761_v18  ;;  %v773_v33 = vadd.f32 -1.0, %v761_v18  ;;  %v98_v36 = vld [vmem:[#allocation7 + $0x28] sm:$0xff]  ;;  %v205_v41 = vld [vmem:[#allocation2 + $0xc] sm:$0xff]  ;;  %s455_s3 = sshll.u32 %s701_s2, 4  ;;  %s456_s3 = int_to_ptr.vmem [resolvable:$true] %s455_s3 }
  0x3c   :  { %v775_v42 = vsub.f32 %v204_v25, %v208_v29  ;;  %v206_v44 = vld [vmem:[#allocation2 + $0x14] sm:$0xf]  ;;  %v209_v45 = vld [vmem:[#allocation5 + $0xc] sm:$0xff]  ;;  %v210_v46 = vld [vmem:[#allocation5 + $0x14] sm:$0xf]  ;;  %vm193_vm7 = vcmask 1041409   ;;  %p603_p7 = scmp.lt.s32.totalorder %s456_s3, %s456_s3 }
  0x3d   :  { %v107_v15 = vrot.slane %v77_v13, %v106_v8  ;;  %v770_v32 = vrot.slane %v761_v18, %v757_v14  ;;  %v777_v57 = vsub.f32 %v205_v41, %v209_v45  ;;  %v779_v58 = vsub.f32 %v206_v44, %v210_v46  ;;  %s465_s24 = sshll.u32 %s702_s23, 4  ;;  %s598_s25 = scalar_lea.vmem %s456_s3, 96  ;;  %s846_s24 = int_to_ptr.vmem [resolvable:$true] %s465_s24 }
  0x3e   :  { %v215_v1 = vand.u32 2147483647, %v764_v30  ;;  %v216_v2 = vand.u32 2147483647, %v775_v42  ;;  %vm92_vm8 = vcmp.lt.s32.totalorder %v759_v16, 300  ;;  %vm245_vm13 = vcmask 1043456   ;;  %p599_p6 = scmp.ne.s32.totalorder %s456_s3, %s598_s25  ;;  %p604_p8 = scmp.lt.s32.totalorder %s598_s25, %s598_s25 }
  0x3f   :  { %v108_v21 = vcombine.high %v107_v15, %v107_v15  ;;  %v112_v22 = vrot.slane %v107_v15, %v111_v10  ;;  %v116_v23 = vrot.slane %v107_v15, %v115_v11  ;;  %v120_v24 = vrot.slane %v107_v15, %v119_v12 }
  0x40   :  { %v217_v9 = vand.u32 2147483647, %v777_v57  ;;  %vm786_vm9 = vcmp.lt.f32.partialorder %v215_v1, 1.0  ;;  %vm790_vm10 = vcmp.lt.f32.partialorder %v216_v2, 1.0  ;;  %v224_v41 = vmul.f32 0.5, %v775_v42  ;;  %p605_p9 = por %p604_p8, %p603_p7 }
  0x41   :  { %v124_v37 = vrot.slane %v108_v21, %v111_v10  ;;  %v128_v38 = vrot.slane %v108_v21, %v115_v11  ;;  %v132_v39 = vrot.slane %v108_v21, %v119_v12  ;;  %vm133_vm1 = vcmp.eq.s32.totalorder %v100_v3, %v112_v22 }
  0x42   :  { %vm134_vm2 = vcmp.eq.s32.totalorder %v100_v3, %v116_v23  ;;  %vm135_vm3 = vcmp.eq.s32.totalorder %v100_v3, %v120_v24  ;;  %v139_v40 = vsel %vm133_vm1, %v93_v20, 0.0  ;;  %v218_v10 = vand.u32 2147483647, %v779_v58  ;;  %p606_p10 = pnand %p605_p9, %p599_p6 }
  0x43   :  { %vm136_vm4 = vcmp.eq.s32.totalorder %v100_v3, %v124_v37  ;;  %vm137_vm5 = vcmp.eq.s32.totalorder %v100_v3, %v128_v38  ;;  %vm138_vm6 = vcmp.eq.s32.totalorder %v100_v3, %v132_v39  ;;  %v140_v43 = vsel %vm134_vm2, %v94_v27, 0.0 }
  0x44   :  { %v141_v47 = vsel %vm135_vm3, %v95_v28, 0.0  ;;  %v142_v48 = vsel %vm136_vm4, %v96_v34, 0.0  ;;  %v143_v49 = vsel %vm137_vm5, %v97_v35, 0.0  ;;  %v144_v50 = vsel %vm138_vm6, %v98_v36, 0.0 }
  0x45   :  { %v145_v51 = vrot.slane %v139_v40, 4  ;;  %v151_v52 = vrot.slane %v140_v43, 4  ;;  %v157_v53 = vrot.slane %v141_v47, 4  ;;  %v163_v54 = vrot.slane %v142_v48, 4 }
  0x46   :  { %v169_v55 = vrot.slane %v143_v49, 4  ;;  %v175_v56 = vrot.slane %v144_v50, 4  ;;  %vm794_vm11 = vcmp.lt.f32.partialorder %v217_v9, 1.0  ;;  %vm798_vm12 = vcmp.lt.f32.partialorder %v218_v10, 1.0 }
  0x47   :  { %v146_v59 = vadd.f32 %v145_v51, %v139_v40  ;;  %v152_v60 = vadd.f32 %v151_v52, %v140_v43  ;;  %v158_v61 = vadd.f32 %v157_v53, %v141_v47  ;;  %v164_v62 = vadd.f32 %v163_v54, %v142_v48 }
  0x48   :  { %v170_v63 = vadd.f32 %v169_v55, %v143_v49  ;;  %v176_v0 = vadd.f32 %v175_v56, %v144_v50  ;;  %v223_v40 = vmul.f32 0.5, %v764_v30  ;;  %v225_v49 = vmul.f32 0.5, %v777_v57 }
  0x49   :  { %v147_v3 = vrot.slane %v146_v59, 2  ;;  %v153_v4 = vrot.slane %v152_v60, 2  ;;  %v159_v5 = vrot.slane %v158_v61, 2  ;;  %v165_v6 = vrot.slane %v164_v62, 2 }
  0x4a   :  { %v171_v7 = vrot.slane %v170_v63, 2  ;;  %v177_v8 = vrot.slane %v176_v0, 2  ;;  %v226_v50 = vmul.f32 0.5, %v779_v58  ;;  %v227_v52 = vmul.f32 %v223_v40, %v764_v30 }
  0x4b   :  { %v148_v11 = vadd.f32 %v147_v3, %v146_v59  ;;  %v154_v12 = vadd.f32 %v153_v4, %v152_v60  ;;  %v160_v13 = vadd.f32 %v159_v5, %v158_v61  ;;  %v166_v15 = vadd.f32 %v165_v6, %v164_v62 }
  0x4c   :  { %v172_v17 = vadd.f32 %v171_v7, %v170_v63  ;;  %v178_v19 = vadd.f32 %v177_v8, %v176_v0  ;;  %v228_v53 = vmul.f32 %v224_v41, %v775_v42  ;;  %v498_v54 = vadd.f32 -0.5, %v215_v1 }
  0x4d   :  { %v149_v22 = vrot.slane %v148_v11, 1  ;;  %v155_v23 = vrot.slane %v154_v12, 1  ;;  %v161_v24 = vrot.slane %v160_v13, 1  ;;  %v167_v25 = vrot.slane %v166_v15, 1 }
  0x4e   :  { %v173_v26 = vrot.slane %v172_v17, 1  ;;  %v179_v27 = vrot.slane %v178_v19, 1  ;;  %v229_v59 = vmul.f32 %v225_v49, %v777_v57  ;;  %v230_v60 = vmul.f32 %v226_v50, %v779_v58 }
  0x4f   :  { %v150_v34 = vadd.f32 %v149_v22, %v148_v11  ;;  %v156_v35 = vadd.f32 %v155_v23, %v154_v12  ;;  %v162_v36 = vadd.f32 %v161_v24, %v160_v13  ;;  %v168_v37 = vadd.f32 %v167_v25, %v166_v15 }
  0x50   :  { %v174_v38 = vadd.f32 %v173_v26, %v172_v17  ;;  %v180_v39 = vadd.f32 %v179_v27, %v178_v19  ;;  %v499_v30 = vadd.f32 -0.5, %v216_v2  ;;  %v500_v63 = vadd.f32 -0.5, %v217_v9 }
  0x51   :  { %v181_v43 = vsub.f32 0.0, %v150_v34  ;;  %v182_v44 = vsub.f32 0.0, %v156_v35  ;;  %v183_v45 = vsub.f32 0.0, %v162_v36  ;;  %v184_v46 = vsub.f32 0.0, %v168_v37 }
  0x52   :  { %v185_v47 = vsub.f32 0.0, %v174_v38  ;;  %v186_v48 = vsub.f32 0.0, %v180_v39  ;;  %v501_v0 = vadd.f32 -0.5, %v218_v10  ;;  %v235_v1 = vsel %vm786_vm9, %v227_v52, %v498_v54 }
  0x53   :  { %v807_v51 = vsel %vm193_vm7, %v184_v46, %v181_v43  ;;  %v831_v57 = vrot.slane %v289_v31, %v757_v14  ;;  %v236_v58 = vsel %vm790_vm10, %v228_v53, %v499_v30  ;;  %v237_v2 = vsel %vm794_vm11, %v229_v59, %v500_v63 }
  0x54   :  { %v812_v55 = vsel %vm193_vm7, %v185_v47, %v182_v44  ;;  %v196_v56 = vsel %vm193_vm7, %v186_v48, %v183_v45  ;;  %v241_v3 = vcombine.high %v235_v1, %v235_v1  ;;  %v238_v4 = vsel %vm798_vm12, %v230_v60, %v501_v0 }
  0x55   :  { %v819_v61 = vsel %vm92_vm8, %v196_v56, 0.0  ;;  %v375_v62 = vcombine.low %v807_v51, %v812_v55  ;;  %v242_v5 = vcombine.high %v237_v2, %v237_v2  ;;  %v246_v18 = vsel %vm245_vm13, %v235_v1, 0.0 }
  0x56   :  { %v389_v42 = vrot.slane %v819_v61, %v757_v14  ;;  %v260_v31 = vsel %vm245_vm13, %v236_v58, 0.0  ;;  %v247_v7 = vrot.slane %v246_v18, 4  ;;  %v253_v8 = vsel %vm245_vm13, %v241_v3, 0.0 }
  0x57   :  { %v382_v16 = vrot.slane %v375_v62, %v757_v14  ;;  %v261_v9 = vrot.slane %v260_v31, 4  ;;  %v254_v10 = vrot.slane %v253_v8, 4  ;;  %v267_v11 = vsel %vm245_vm13, %v237_v2, 0.0 }
  0x58   :  { %v274_v12 = vsel %vm245_vm13, %v242_v5, 0.0  ;;  %v281_v13 = vsel %vm245_vm13, %v238_v4, 0.0  ;;  %v248_v15 = vadd.f32 %v247_v7, %v246_v18  ;;  %v268_v19 = vrot.slane %v267_v11, 4 }
  0x59   :  { %v390_v6 = vcombine.low %v382_v16, %v389_v42  ;;  %v262_v17 = vadd.f32 %v261_v9, %v260_v31  ;;  %v275_v20 = vrot.slane %v274_v12, 4  ;;  %v255_v21 = vadd.f32 %v254_v10, %v253_v8 }
  0x5a   :  { %v282_v22 = vrot.slane %v281_v13, 4  ;;  %v304_v23 = vcombine.high %v770_v32, %v770_v32  ;;  %v305_v24 = vrot.slane %v770_v32, 1 }
  0x5b   :  { %392 = vst [vmem:[#allocation11] sm:$0x3f] %v390_v6 }
  0x5c   :  { %609 = shalt.err (!%p606_p10)
}
  0x5d   :  { %458 = dma.vmem_to_hbm [thread:$0]  %s456_s3, 96, %s891_s5, [#allocation12]   ;;  %v249_v25 = vrot.slane %v248_v15, 2  ;;  %v263_v26 = vrot.slane %v262_v17, 2  ;;  %v269_v27 = vadd.f32 %v268_v19, %v267_v11  ;;  %v276_v28 = vadd.f32 %v275_v20, %v274_v12 }
  0x5e   :  { %s618_s28 = scalar_lea.vmem %s846_s24, 96  ;;  %p623_p12 = scmp.lt.s32.totalorder %s846_s24, %s846_s24 }
  0x5f   :  { %p619_p11 = scmp.ne.s32.totalorder %s846_s24, %s618_s28  ;;  %p624_p13 = scmp.lt.s32.totalorder %s618_s28, %s618_s28 }
  0x61   :  { %p625_p0 = por %p624_p13, %p623_p12 }
  0x63   :  { %p626_p1 = pnand %p625_p0, %p619_p11 }
  0x65   :  { %629 = shalt.err (!%p626_p1)
}
  0x66   :  { %468 = dma.vmem_to_hbm [thread:$0]  %s846_s24, 96, %s892_s6, [#allocation12]   ;;  %v256_v29 = vrot.slane %v255_v21, 2  ;;  %v283_v34 = vadd.f32 %v282_v22, %v281_v13  ;;  %v306_v35 = vrot.slane %v304_v23, 1  ;;  %v307_v36 = vrot.slane %v831_v57, 1 }
  0x67   :  { %v250_v37 = vadd.f32 %v249_v25, %v248_v15  ;;  %v264_v38 = vadd.f32 %v263_v26, %v262_v17  ;;  %v270_v39 = vrot.slane %v269_v27, 2  ;;  %v277_v40 = vrot.slane %v276_v28, 2  ;;  %s703_s5 = smov [#allocation10]  }
  0x68   :  { %v257_v41 = vadd.f32 %v256_v29, %v255_v21  ;;  %v284_v43 = vrot.slane %v283_v34, 2  ;;  %v396_v44 = vcombine.high %v773_v33, %v773_v33  ;;  %v403_v45 = vrot.slane %v773_v33, %v757_v14  ;;  %s445_s6 = sshll.u32 %s703_s5, 4  ;;  %s446_s6 = int_to_ptr.vmem [resolvable:$true] %s445_s6 }
  0x69   :  { %v251_v46 = vrot.slane %v250_v37, 1  ;;  %v265_v47 = vrot.slane %v264_v38, 1  ;;  %v271_v48 = vadd.f32 %v270_v39, %v269_v27  ;;  %v278_v49 = vadd.f32 %v277_v40, %v276_v28  ;;  %s638_s8 = scalar_lea.vmem %s446_s6, 96  ;;  %p643_p3 = scmp.lt.s32.totalorder %s446_s6, %s446_s6 }
  0x6a   :  { %v258_v50 = vrot.slane %v257_v41, 1  ;;  %v285_v52 = vadd.f32 %v284_v43, %v283_v34  ;;  %v410_v53 = vrot.slane %v396_v44, %v757_v14  ;;  %v411_v54 = vcombine.high %v403_v45, %v403_v45  ;;  %p639_p2 = scmp.ne.s32.totalorder %s446_s6, %s638_s8  ;;  %p644_p4 = scmp.lt.s32.totalorder %s638_s8, %s638_s8 }
  0x6b   :  { %v252_v56 = vadd.f32 %v251_v46, %v250_v37  ;;  %v266_v59 = vadd.f32 %v265_v47, %v264_v38  ;;  %v272_v60 = vrot.slane %v271_v48, 1  ;;  %v279_v62 = vrot.slane %v278_v49, 1 }
  0x6c   :  { %v259_v30 = vadd.f32 %v258_v50, %v257_v41  ;;  %v286_v63 = vrot.slane %v285_v52, 1  ;;  %v415_v42 = vmul.f32 %v403_v45, %v807_v51  ;;  %v416_v0 = vmul.f32 %v411_v54, %v812_v55  ;;  %p645_p5 = por %p644_p4, %p643_p3 }
  0x6d   :  { %v273_v33 = vadd.f32 %v272_v60, %v271_v48  ;;  %v280_v1 = vadd.f32 %v279_v62, %v278_v49  ;;  %v314_v16 = vmul.f32 %v770_v32, %v252_v56  ;;  %v316_v58 = vmul.f32 %v831_v57, %v266_v59 }
  0x6e   :  { %v287_v2 = vadd.f32 %v286_v63, %v285_v52  ;;  %v315_v3 = vmul.f32 %v304_v23, %v259_v30  ;;  %v417_v4 = vmul.f32 %v410_v53, %v819_v61  ;;  %v421_v5 = vcombine.low %v415_v42, %v416_v0  ;;  %p646_p6 = pnand %p645_p5, %p639_p2 }
  0x6f   :  { %v317_v18 = vmul.f32 %v305_v24, %v273_v33  ;;  %v318_v31 = vmul.f32 %v306_v35, %v280_v1  ;;  %v340_v8 = vrot.slane %v316_v58, %v757_v14 }
  0x70   :  { %v319_v6 = vmul.f32 %v307_v36, %v287_v2  ;;  %v326_v7 = vcombine.low %v314_v16, %v315_v3  ;;  %v428_v51 = vrot.slane %v421_v5, %v757_v14  ;;  %v435_v55 = vrot.slane %v417_v4, %v757_v14 }
  0x71   :  { %v342_v32 = vcombine.low %v317_v18, %v318_v31 }
  0x72   :  { %v333_v57 = vrot.slane %v326_v7, %v757_v14  ;;  %v356_v9 = vrot.slane %v319_v6, %v757_v14  ;;  %v436_v10 = vcombine.low %v428_v51, %v435_v55 }
  0x73   :  { %v349_v61 = vrot.slane %v342_v32, %v757_v14 }
  0x74   :  { %438 = vst [vmem:[#allocation10] sm:$0x3f] %v436_v10  ;;  %v341_v11 = vcombine.low %v333_v57, %v340_v8 }
  0x75   :  { %v357_v12 = vcombine.low %v349_v61, %v356_v9 }
  0x76   :  { %649 = shalt.err (!%p646_p6)
}
  0x77   :  { %448 = dma.vmem_to_hbm [thread:$0]  %s446_s6, 96, %s890_s4, [#allocation4]   ;;  %v362_v13 = vrot.slane %v357_v12, 7  ;;  %vm364_vm14 = vcmask 1043459   ;;  %vm366_vm15 = vcmask 1045509   ;;  %vm368_vm0 = vcmask 1047559  }
  0x78   :  { %s704_s11 = smov [#allocation14]  }
  0x79   :  { %s475_s12 = sshll.u32 %s704_s11, 4  ;;  %v363_v14 = vsel %vm193_vm7, %v362_v13, %v341_v11  ;;  %s476_s12 = int_to_ptr.vmem [resolvable:$true] %s475_s12 }
  0x7a   :  { %v365_v15 = vsel %vm364_vm14, %v362_v13, %v363_v14  ;;  %s658_s13 = scalar_lea.vmem %s476_s12, 96  ;;  %p663_p8 = scmp.lt.s32.totalorder %s476_s12, %s476_s12 }
  0x7b   :  { %v367_v17 = vsel %vm366_vm15, %v362_v13, %v365_v15  ;;  %p659_p7 = scmp.ne.s32.totalorder %s476_s12, %s658_s13  ;;  %p664_p9 = scmp.lt.s32.totalorder %s658_s13, %s658_s13 }
  0x7c   :  { %v369_v19 = vsel %vm368_vm0, %v362_v13, %v367_v17 }
  0x7d   :  { %371 = vst [vmem:[#allocation14] sm:$0x3f] %v369_v19  ;;  %p665_p10 = por %p664_p9, %p663_p8 }
  0x7f   :  { %p666_p11 = pnand %p665_p10, %p659_p7 }
  0x81   :  { %669 = shalt.err (!%p666_p11)
}
  0x82   :  { %478 = dma.vmem_to_hbm [thread:$0]  %s476_s12, 96, %s893_s7, [#allocation15]  }
  0x83   :  { %684 = dma.done.wait [#allocation4], 96  }
  0x84   :  { %685 = vsyncadd [#allocation4], 4294967200 }
  0x85   :  { %686 = dma.done.wait [#allocation12], 192  }
  0x86   :  { %687 = vsyncadd [#allocation12], 4294967104 }
  0x87   :  { %688 = dma.done.wait [#allocation15], 96  }
  0x88   :  { %689 = vsyncadd [#allocation15], 4294967200 }
  0x89   :  { %491 = vsyncpa [#allocation3], 1 }
  0x8a   :  { %492 = vsyncpa [#allocation6], 1 }
  0x8b   :  { %493 = vsyncpa [#allocation9], 1 }
  0x8c   :  { %494 = vsyncpa [#allocation4], 1 }
  0x8d   :  { %495 = vsyncpa [#allocation12], 1 }
  0x8e   :  { %496 = vsyncpa [#allocation15], 1 }

</bundles_post_ra>
